<compile_context>
chip_gen: v5e
topology: v5e:2x2
jax: 0.10.0
libtpu: 0.0.40
codegen_flags: <defaults>
</compile_context>

<pallas_src>
import functools

import jax
import jax.numpy as jnp
from jax.experimental import pallas as pl
from jax.experimental.pallas import tpu as pltpu


def _round_up(x, m):
    return ((x + m - 1) // m) * m


def _vmem_capacity_bytes():
    """Chip VMEM capacity (v5e/v6e 128 MiB, v7x 64 MiB), with a safe fallback."""
    try:
        info = pltpu.get_tpu_info()
        cap = getattr(info, "vmem_capacity_bytes", None)
        if cap:
            return int(cap)
    except Exception:
        pass
    return 64 * 1024 * 1024


# ---------------------------------------------------------------------------
# Kernels
# ---------------------------------------------------------------------------

def _small_kernel(x_ref, w_ref, b_ref, o_ref, *, compute_dtype):
    """Whole problem in one block: o = x @ w + b (w already (K, N))."""
    acc = jnp.dot(
        x_ref[...].astype(compute_dtype),
        w_ref[...].astype(compute_dtype),
        preferred_element_type=jnp.float32,
    )
    o_ref[...] = (acc + b_ref[...]).astype(o_ref.dtype)


def _single_k_kernel(x_ref, w_ref, b_ref, o_ref, *, compute_dtype):
    """Whole contraction dim in one block: o_tile = x_tile @ w_tile + b_tile."""
    acc = jnp.dot(
        x_ref[...].astype(compute_dtype),
        w_ref[...].astype(compute_dtype),
        preferred_element_type=jnp.float32,
    )
    o_ref[...] = (acc + b_ref[...]).astype(o_ref.dtype)


def _multi_k_kernel(x_ref, w_ref, b_ref, o_ref, acc_ref, *, compute_dtype):
    """K tiled: accumulate into a VMEM f32 scratch, write once on the last k.

    Correctness requires k to be the LAST grid axis, marked "arbitrary", with a
    k-invariant output index_map (output-block revisit semantics). Do not
    reorder the grid or mark k "parallel".
    """
    k = pl.program_id(2)

    @pl.when(k == 0)
    def _():
        acc_ref[...] = jnp.zeros_like(acc_ref)

    acc_ref[...] += jnp.dot(
        x_ref[...].astype(compute_dtype),
        w_ref[...].astype(compute_dtype),
        preferred_element_type=jnp.float32,
    )

    @pl.when(k == pl.num_programs(2) - 1)
    def _():
        o_ref[...] = (acc_ref[...] + b_ref[...]).astype(o_ref.dtype)


# ---------------------------------------------------------------------------
# Wrappers
# ---------------------------------------------------------------------------

def _linear_small(x, w_t, b2d, out_dtype, compute_dtype):
    """Single-block path: no padding, no slicing, grid of one program."""
    M, K = x.shape
    Kw, N = w_t.shape
    kernel = functools.partial(_small_kernel, compute_dtype=compute_dtype)
    return pl.pallas_call(
        kernel,
        out_shape=jax.ShapeDtypeStruct((M, N), out_dtype),
        grid=(1,),
        in_specs=[
            pl.BlockSpec((M, K), lambda i: (0, 0)),
            pl.BlockSpec((Kw, N), lambda i: (0, 0)),
            pl.BlockSpec((1, N), lambda i: (0, 0)),
        ],
        out_specs=pl.BlockSpec((M, N), lambda i: (0, 0)),
    )(x, w_t, b2d)


def _linear_tiled(x, w_pad, b_pad, n_out, *, tm, tn_eff, tk_eff, m_align,
                  out_dtype, compute_dtype):
    """General tiled path. x:(M,K); w_pad:(Kp,Np) pre-transposed/padded; b_pad:(1,Np)."""
    M, K = x.shape
    Kp, Np = w_pad.shape

    tm_eff = min(tm, _round_up(M, m_align))
    Mp = _round_up(M, tm_eff)
    if (Mp, Kp) != (M, K):
        # Only the (cheap) activation is padded per call; the weight pad is static.
        x = jnp.pad(x, ((0, Mp - M), (0, Kp - K)))

    mt, nt, kt = Mp // tm_eff, Np // tn_eff, Kp // tk_eff

    # v7x has 2 TensorCores sharding parallel grid axes: guarantee >= 2 blocks on
    # a parallel axis when the grid would otherwise degenerate to (1, 1[, k]).
    if mt == 1 and nt == 1:
        if Np % 256 == 0:
            tn_eff = Np // 2
            nt = 2
        elif Mp % (2 * m_align) == 0:
            tm_eff = Mp // 2
            mt = 2

    # VMEM budget from actual tile math: double-buffered inputs/outputs + scratch.
    x_b = x.dtype.itemsize
    w_b = w_pad.dtype.itemsize
    o_b = jnp.zeros((), out_dtype).dtype.itemsize
    need = (2 * (tm_eff * tk_eff * x_b + tk_eff * tn_eff * w_b
                 + tn_eff * 4 + tm_eff * tn_eff * o_b)
            + tm_eff * tn_eff * 4)
    vmem_limit = max(32 * 1024 * 1024,
                     min(int(need * 1.5), int(_vmem_capacity_bytes() * 0.9)))

    if kt == 1:
        # Single K block: no reduction axis, no accumulator scratch.
        kernel = functools.partial(_single_k_kernel, compute_dtype=compute_dtype)
        out = pl.pallas_call(
            kernel,
            out_shape=jax.ShapeDtypeStruct((Mp, Np), out_dtype),
            grid_spec=pltpu.PrefetchScalarGridSpec(
                num_scalar_prefetch=0,
                grid=(mt, nt),
                in_specs=[
                    pl.BlockSpec((tm_eff, Kp), lambda i, j: (i, 0)),      # x
                    pl.BlockSpec((Kp, tn_eff), lambda i, j: (0, j)),      # w (K,N)
                    pl.BlockSpec((1, tn_eff), lambda i, j: (0, j)),       # bias
                ],
                out_specs=pl.BlockSpec((tm_eff, tn_eff), lambda i, j: (i, j)),
            ),
            compiler_params=pltpu.CompilerParams(
                dimension_semantics=("parallel", "parallel"),
                vmem_limit_bytes=vmem_limit,
            ),
        )(x, w_pad, b_pad)
    else:
        # Tiled reduction over K (LAST grid axis, "arbitrary"): f32 VMEM scratch
        # accumulator; bias folded into the single out_dtype store on the last k.
        kernel = functools.partial(_multi_k_kernel, compute_dtype=compute_dtype)
        out = pl.pallas_call(
            kernel,
            out_shape=jax.ShapeDtypeStruct((Mp, Np), out_dtype),
            grid_spec=pltpu.PrefetchScalarGridSpec(
                num_scalar_prefetch=0,
                grid=(mt, nt, kt),
                in_specs=[
                    pl.BlockSpec((tm_eff, tk_eff), lambda i, j, k: (i, k)),
                    pl.BlockSpec((tk_eff, tn_eff), lambda i, j, k: (k, j)),
                    pl.BlockSpec((1, tn_eff), lambda i, j, k: (0, j)),
                ],
                out_specs=pl.BlockSpec((tm_eff, tn_eff), lambda i, j, k: (i, j)),
                scratch_shapes=[pltpu.VMEM((tm_eff, tn_eff), jnp.float32)],
            ),
            compiler_params=pltpu.CompilerParams(
                dimension_semantics=("parallel", "parallel", "arbitrary"),
                vmem_limit_bytes=vmem_limit,
            ),
        )(x, w_pad, b_pad)

    if (Mp, Np) != (M, n_out):
        out = out[:M, :n_out]
    return out


class TextEncoderPallas:
    """Pallas port of TextEncoder: forward(text) = text @ W^T + b.

    All weight-sized work (transpose to (K, N), pad to tile multiples, optional
    bf16 cast) happens once here at init, mirroring nn.Module construction.
    """

    def __init__(self, weight, bias, *, tm=512, tn=1024, tk=1024, use_bf16=False):
        # weight: (out_features N, in_features K) PyTorch nn.Linear layout.
        weight = jnp.asarray(weight)
        bias = jnp.asarray(bias)
        N, K = weight.shape
        assert bias.shape == (N,)
        self.N, self.K = N, K
        self.tm = tm
        self.use_bf16 = use_bf16
        # TODO(synk): bf16x3 variant for near-f32 accuracy with bf16 bandwidth.
        self.compute_dtype = jnp.bfloat16 if use_bf16 else weight.dtype
        self.m_align = 16 if use_bf16 else 8  # bf16 sublane packing

        # Lane-dense tile sizes for the general path (independent of M).
        # Defaults (tk,tn<=1024 f32) fit v7x's 64 MiB VMEM; raise tk on v5e/v6e.
        self.tn_eff = min(tn, _round_up(N, 128))
        self.tk_eff = min(tk, _round_up(K, 128))
        self.Np = _round_up(N, self.tn_eff)
        self.Kp = _round_up(K, self.tk_eff)

        # One-time static transforms of the weight/bias.
        w_t = weight.T  # (K, N): plain (M,K)x(K,N) dot, no per-tile trans-B.
        self.w_small = w_t.astype(self.compute_dtype)                  # tiny path
        self.b_small = bias.reshape(1, N).astype(jnp.float32)
        self.w_pad = jnp.pad(
            w_t, ((0, self.Kp - K), (0, self.Np - N))).astype(self.compute_dtype)
        self.b_pad = jnp.pad(bias, (0, self.Np - N)).reshape(1, self.Np).astype(
            jnp.float32)

        # Tiny-problem bypass if the weight is comfortably below ~1 MiB.
        self.tiny_weight = (N * K * weight.dtype.itemsize) <= (1 << 20)

    def __call__(self, text):
        text = jnp.asarray(text)
        M, K = text.shape
        assert K == self.K, "weight in_features must match text feature dim"
        out_dtype = text.dtype

        # Tiny bypass: whole problem in one block, no pad / slice / grid overhead.
        if (self.tiny_weight and M <= 1024
                and (M * K + K * self.N + M * self.N) * 4 <= (8 << 20)):
            return _linear_small(text, self.w_small, self.b_small,
                                 out_dtype, self.compute_dtype)

        return _linear_tiled(
            text, self.w_pad, self.b_pad, self.N,
            tm=self.tm, tn_eff=self.tn_eff, tk_eff=self.tk_eff,
            m_align=self.m_align, out_dtype=out_dtype,
            compute_dtype=self.compute_dtype)


if __name__ == "__main__":
    # Shapes consistent with TextEncoder(text_input_dim=32, text_embedding_dim=64).
    batch, text_input_dim, text_embedding_dim = 8, 32, 64

    key = jax.random.PRNGKey(0)
    k_x, k_w, k_b = jax.random.split(key, 3)
    text = jax.random.normal(k_x, (batch, text_input_dim), dtype=jnp.float32)
    weight = jax.random.normal(
        k_w, (text_embedding_dim, text_input_dim), dtype=jnp.float32
    ) * (1.0 / jnp.sqrt(text_input_dim))
    bias = jax.random.normal(k_b, (text_embedding_dim,), dtype=jnp.float32) * 0.01

    # 1) Tiny-bypass path (the actual TextEncoder regime).
    enc = TextEncoderPallas(weight, bias)
    out = jax.block_until_ready(enc(text))
    ref = text @ weight.T + bias
    assert out.shape == (batch, text_embedding_dim)
    assert jnp.allclose(out, ref, atol=1e-5, rtol=1e-5)

    # 2) General single-K path (also exercises the 2-TensorCore N split).
    kx, kw, kb = jax.random.split(jax.random.PRNGKey(1), 3)
    M2, K2, N2 = 16, 512, 1024
    text2 = jax.random.normal(kx, (M2, K2), dtype=jnp.float32)
    weight2 = jax.random.normal(kw, (N2, K2), dtype=jnp.float32) * (1.0 / jnp.sqrt(K2))
    bias2 = jax.random.normal(kb, (N2,), dtype=jnp.float32) * 0.01
    enc2 = TextEncoderPallas(weight2, bias2)
    out2 = jax.block_until_ready(enc2(text2))
    ref2 = text2 @ weight2.T + bias2
    assert jnp.allclose(out2, ref2, atol=1e-4, rtol=1e-4)

    # 3) General multi-K path (VMEM scratch accumulation) with small tiles.
    kx, kw, kb = jax.random.split(jax.random.PRNGKey(2), 3)
    M3, K3, N3 = 16, 1024, 512
    text3 = jax.random.normal(kx, (M3, K3), dtype=jnp.float32)
    weight3 = jax.random.normal(kw, (N3, K3), dtype=jnp.float32) * (1.0 / jnp.sqrt(K3))
    bias3 = jax.random.normal(kb, (N3,), dtype=jnp.float32) * 0.01
    enc3 = TextEncoderPallas(weight3, bias3, tm=16, tn=256, tk=256)
    out3 = jax.block_until_ready(enc3(text3))
    ref3 = text3 @ weight3.T + bias3
    assert jnp.allclose(out3, ref3, atol=1e-4, rtol=1e-4)

    # 4) bf16 MXU path (f32 accumulation) on the TextEncoder shapes.
    enc_bf16 = TextEncoderPallas(weight, bias, use_bf16=True)
    out_bf16 = jax.block_until_ready(enc_bf16(text))
    assert out_bf16.shape == (batch, text_embedding_dim)
    assert jnp.allclose(out_bf16, ref, atol=5e-2, rtol=5e-2)

    print("KERNEL_OK")
</pallas_src>

<mosaic_0001>
module attributes {stable_mosaic.version = 11 : i64} {
  func.func @_small_kernel(%arg0: i32, %arg1: memref<8x32xf32, #tpu.memory_space<vmem>>, %arg2: memref<32x64xf32, #tpu.memory_space<vmem>>, %arg3: memref<1x64xf32, #tpu.memory_space<vmem>>, %arg4: memref<8x64xf32, #tpu.memory_space<vmem>>) attributes {dimension_semantics = [#tpu.dimension_semantics<arbitrary>], iteration_bounds = array<i64: 1>, scalar_prefetch = 0 : i64, scratch_operands = 0 : i64, tpu.core_type = #tpu.core_type<tc>, window_params = [{pipeline_mode = #tpu.pipeline_mode<synchronous>, transform_indices = @transform_0, window_bounds = array<i64: 8, 32>}, {pipeline_mode = #tpu.pipeline_mode<synchronous>, transform_indices = @transform_1, window_bounds = array<i64: 32, 64>}, {pipeline_mode = #tpu.pipeline_mode<synchronous>, transform_indices = @transform_2, window_bounds = array<i64: 1, 64>}, {pipeline_mode = #tpu.pipeline_mode<synchronous>, transform_indices = @transform_3, window_bounds = array<i64: 8, 64>}]} {
    %c0 = arith.constant 0 : index
    %c0_0 = arith.constant 0 : index
    %0 = vector.load %arg1[%c0, %c0_0] : memref<8x32xf32, #tpu.memory_space<vmem>>, vector<8x32xf32>
    %c0_1 = arith.constant 0 : index
    %c0_2 = arith.constant 0 : index
    %1 = vector.load %arg2[%c0_1, %c0_2] : memref<32x64xf32, #tpu.memory_space<vmem>>, vector<32x64xf32>
    %cst = arith.constant dense<0.000000e+00> : vector<8x64xf32>
    %2 = tpu.matmul %0, %1, %cst {dimension_numbers = #tpu.dot_dimension_numbers<[1], [0], [0], [1], [0, 0, 1, 1], [], []>} : vector<8x32xf32>, vector<32x64xf32>, vector<8x64xf32> -> vector<8x64xf32>
    %c0_3 = arith.constant 0 : index
    %c0_4 = arith.constant 0 : index
    %3 = vector.load %arg3[%c0_3, %c0_4] : memref<1x64xf32, #tpu.memory_space<vmem>>, vector<1x64xf32>
    %4 = vector.broadcast %3 : vector<1x64xf32> to vector<8x64xf32>
    %5 = arith.addf %2, %4 : vector<8x64xf32>
    %c0_5 = arith.constant 0 : index
    %c0_6 = arith.constant 0 : index
    %6 = vector.load %arg4[%c0_5, %c0_6] : memref<8x64xf32, #tpu.memory_space<vmem>>, vector<8x64xf32>
    tpu.vector_store %arg4[%c0_5, %c0_6], %5 {strides = array<i32>} : memref<8x64xf32, #tpu.memory_space<vmem>>, vector<8x64xf32>,
    return
  }
  func.func @transform_0(%arg0: i32) -> (i32, i32) {
    %c0_i32 = arith.constant 0 : i32
    %c0_i32_0 = arith.constant 0 : i32
    %c0_i32_1 = arith.constant 0 : i32
    return %c0_i32, %c0_i32_0 : i32, i32
  }
  func.func @transform_1(%arg0: i32) -> (i32, i32) {
    %c0_i32 = arith.constant 0 : i32
    %c0_i32_0 = arith.constant 0 : i32
    %c0_i32_1 = arith.constant 0 : i32
    return %c0_i32, %c0_i32_0 : i32, i32
  }
  func.func @transform_2(%arg0: i32) -> (i32, i32) {
    %c0_i32 = arith.constant 0 : i32
    %c0_i32_0 = arith.constant 0 : i32
    %c0_i32_1 = arith.constant 0 : i32
    return %c0_i32, %c0_i32_0 : i32, i32
  }
  func.func @transform_3(%arg0: i32) -> (i32, i32) {
    %c0_i32 = arith.constant 0 : i32
    %c0_i32_0 = arith.constant 0 : i32
    %c0_i32_1 = arith.constant 0 : i32
    return %c0_i32, %c0_i32_0 : i32, i32
  }
}

</mosaic_0001>

<bundles_post_ra>
// kernel: tpu_custom_call.1
= control target key start
LH: loop header
LB: loop body
LE: loop exit
PB: predicated region body
PF: predicated region fallthrough
CT: control target
= control target key end

     0   :  { %8 = vsyncpa [#allocation3], 0  ;;  %s220_s0 = inlined_call_operand.hbm [shape: f32[8,32], index: 0, kind: input, shape index: {}]   ;;  %s221_s1 = inlined_call_operand.hbm [shape: f32[32,64], index: 1, kind: input, shape index: {}]   ;;  %s222_s2 = inlined_call_operand.vmem [shape: f32[1,64], index: 2, kind: input, shape index: {}]   ;;  %s223_s3 = inlined_call_operand.hbm [shape: f32[8,64], index: 3, kind: output, shape index: {}]  }
   0x1   :  { %9 = vsyncpa [#allocation6], 0 }
   0x2   :  { %10 = vsyncpa [#allocation4], 0  ;;  %s16_s14 = sshll.u32 %s220_s0, 4  ;;  %s183_s15 = smov [#allocation2]   ;;  %s17_s14 = int_to_ptr.hbm [resolvable:$true] %s16_s14 }
   0x3   :  { %s18_s16 = sshll.u32 %s183_s15, 4  ;;  %s26_s19 = sshll.u32 %s221_s1, 4  ;;  %s19_s16 = int_to_ptr.vmem [resolvable:$true] %s18_s16  ;;  %s27_s19 = int_to_ptr.hbm [resolvable:$true] %s26_s19 }
   0x4   :  { %21 = dma.hbm_to_vmem [thread:$0]  %s17_s14, 128, %s19_s16, [#allocation3]  }
   0x5   :  { %s184_s20 = smov [#allocation5]   ;;  %s185_s22 = smov 128  }
   0x6   :  { %s28_s21 = sshll.u32 %s184_s20, 4  ;;  %s186_s23 = smov 8   ;;  %s29_s21 = int_to_ptr.vmem [resolvable:$true] %s28_s21 }
   0x7   :  { %34 = dma.hbm_to_vmem [thread:$0]  %s27_s19, 512, %s29_s21, [#allocation6], %s185_s22, %s185_s22, %s186_s23  }
   0x8   :  { %177 = dma.done.wait [#allocation3], 128  }
   0x9   :  { %178 = vsyncadd [#allocation3], 4294967168 }
   0xa   :  { %179 = dma.done.wait [#allocation6], 512  }
   0xb   :  { %180 = vsyncadd [#allocation6], 4294966784  ;;  %v49_v0 = vld [vmem:[#allocation5 + $0x18] sm:$0xff]  ;;  %v48_v1 = vld [vmem:[#allocation5 + $0x10] sm:$0xff]  ;;  %vm54_vm0 = vcmask 261120   ;;  %s187_s24 = smov [#allocation7]  }
   0xc   :  { %70 = vmatpush.msra.mxu0 %v49_v0  ;;  %v47_v2 = vld [vmem:[#allocation5 + $0x8] sm:$0xff]  ;;  %v46_v3 = vld [vmem:[#allocation5] sm:$0xff]  ;;  %v45_v4 = vld [vmem:[#allocation2] sm:$0xff]  ;;  %s85_s25 = sshll.u32 %s187_s24, 4  ;;  %s87_s28 = sshll.u32 %s223_s3, 4  ;;  %vm78_vm1 = vcmask 523264   ;;  %s86_s25 = int_to_ptr.vmem [resolvable:$true] %s85_s25  ;;  %s88_s28 = int_to_ptr.hbm [resolvable:$true] %s87_s28 }
   0xd   :  { %v104_v5 = vld [vmem:[%s222_s2] ss:$0 sm:$0xff] }
   0xe   :  { %71 = vmatpush.msra.mxu0 %v48_v1 }
  0x10   :  { %72 = vmatpush.msra.mxu0 %v47_v2 }
  0x12   :  { %73 = vmatpush.msra.mxu0 %v46_v3 }
  0x13   :  { %98 = vmatmul.msk.f32.vlgmr.msra.gmra.mxu0 %vm54_vm0, %v45_v4 }
  0x90   :  { %v75_v6 = vpop.f32.mrf.mxu0 }
  0x91   :  { %v76_v7 = vadd.f32 %v104_v5, %v75_v6 }
  0x93   :  { %79 = vst.msk [vmem:[#allocation7] sm:$0xff] %vm78_vm1, %v76_v7 }
  0x94   :  { %90 = dma.vmem_to_hbm [thread:$0]  %s86_s25, 128, %s88_s28, [#allocation4]  }
  0x95   :  { %181 = dma.done.wait [#allocation4], 128  }
  0x96   :  { %182 = vsyncadd [#allocation4], 4294967168 }
  0x97   :  { %95 = vsyncpa [#allocation3], 1 }
  0x98   :  { %96 = vsyncpa [#allocation6], 1 }
  0x99   :  { %97 = vsyncpa [#allocation4], 1 }

</bundles_post_ra>
